<compile_context>
chip_gen: v7x
topology: tpu7x:2x2x1
jax: 0.10.0
libtpu: 0.0.40
codegen_flags: <defaults>
</compile_context>

<pallas_src>
import jax
import jax.numpy as jnp
from jax.experimental import pallas as pl
from jax.experimental.pallas import tpu as pltpu


def _round_up(n: int, m: int) -> int:
    return ((n + m - 1) // m) * m


def _make_noisy_linear_kernel(in_f: int, out_f: int, with_noise: bool):
    """z[j, :] = sum_i w[i, j] * x[i, :] + b[j]  -- unrolled VPU FMAs, no MXU."""

    def kernel(*refs):
        if with_noise:
            params_ref, x_ref, noise_ref, o_ref = refs
        else:
            params_ref, x_ref, o_ref = refs

        x = x_ref[...]                               # (in_f, TB) f32, lane-dense
        if with_noise:
            x = x + noise_ref[...]                   # training: x_new = x + noise

        # Static row views, hoisted once.
        x_rows = [x[i:i + 1, :] for i in range(in_f)]

        # params layout: [w (in_f*out_f, row-major), b (out_f)] -- scalars in SMEM.
        bias_off = in_f * out_f
        for j in range(out_f):
            acc = params_ref[0 * out_f + j] * x_rows[0]
            for i in range(1, in_f):
                acc = acc + params_ref[i * out_f + j] * x_rows[i]
            acc = acc + params_ref[bias_off + j]
            o_ref[pl.ds(j, 1), :] = acc              # (1, TB) lane-dense store

    return kernel


def noisy_linear_forward(x, w, b, *, training=False, noise=None,
                         noise_stddev=0.1, key=None, block_b=2048):
    """Pallas TPU forward of NoisyLinear.

    x: (B, in_f), w: (in_f, out_f), b: (out_f,).  Returns (B, out_f) f32.
    In training mode `noise` (same shape as x) is added to x inside the kernel;
    supply it explicitly or pass `key` to draw N(0, noise_stddev) noise.
    """
    x = jnp.asarray(x, jnp.float32)
    w = jnp.asarray(w, jnp.float32)
    b = jnp.asarray(b, jnp.float32)
    B, in_f = x.shape
    out_f = w.shape[1]

    if training and noise is None:
        if key is None:
            raise ValueError("training=True requires `noise` or `key`")
        # TODO(synk): could sample the Gaussian in-kernel with pltpu.prng_seed +
        # pltpu.prng_random_bits and skip this HBM round-trip for the noise tensor.
        noise = noise_stddev * jax.random.normal(key, x.shape, jnp.float32)

    # ---- layout plumbing: feature-major, batch padded to lane-dense tiles ----
    lane_b = _round_up(max(B, 1), 128)
    tb = min(_round_up(block_b, 128), lane_b)        # batch tile, multiple of 128
    b_pad = _round_up(B, tb)
    num_tiles = b_pad // tb

    def to_feature_major(a):                         # (B, F) -> (F, B_pad)
        a_t = a.astype(jnp.float32).T
        return jnp.pad(a_t, ((0, 0), (0, b_pad - B)))

    params = jnp.concatenate([w.reshape(-1), b.reshape(-1)])   # one tiny SMEM slab
    operands = [params, to_feature_major(x)]

    in_specs = [
        pl.BlockSpec(memory_space=pltpu.SMEM),                     # packed w, b
        pl.BlockSpec((in_f, tb), lambda i: (0, i)),                # x tile
    ]
    if training:
        operands.append(to_feature_major(noise))
        in_specs.append(pl.BlockSpec((in_f, tb), lambda i: (0, i)))  # noise tile

    kernel = _make_noisy_linear_kernel(in_f, out_f, with_noise=training)

    out_fm = pl.pallas_call(
        kernel,
        grid=(num_tiles,),
        in_specs=in_specs,
        out_specs=pl.BlockSpec((out_f, tb), lambda i: (0, i)),
        out_shape=jax.ShapeDtypeStruct((out_f, b_pad), jnp.float32),
        compiler_params=pltpu.CompilerParams(
            # independent batch tiles -> shard across v7x's two TensorCores;
            # harmless (serial) on v5e/v6e.
            dimension_semantics=("parallel",),
        ),
    )(*operands)

    return out_fm[:, :B].T                            # back to (B, out_f)


def xavier_uniform(key, in_f, out_f):
    bound = (6.0 / (in_f + out_f)) ** 0.5
    return jax.random.uniform(key, (in_f, out_f), jnp.float32, -bound, bound)


def reference(x, w, b, noise=None):
    x_new = x if noise is None else x + noise
    return x_new @ w + b


if __name__ == "__main__":
    key = jax.random.PRNGKey(0)
    k_w, k_x, k_n = jax.random.split(key, 3)

    batch, in_f, out_f = 8, 4, 4
    w = xavier_uniform(k_w, in_f, out_f)              # nn.init.xavier_uniform_
    b = jnp.zeros((out_f,), jnp.float32)              # torch.Tensor(out).fill_(0)
    x = jax.random.normal(k_x, (batch, in_f), jnp.float32)

    # eval path (training=False): y = x @ w + b
    y_eval = jax.block_until_ready(noisy_linear_forward(x, w, b, training=False))
    assert y_eval.shape == (batch, out_f)
    assert jnp.allclose(y_eval, reference(x, w, b), atol=1e-5, rtol=1e-5), \
        "eval-path mismatch vs reference"

    # training path: y = (x + noise) @ w + b, noise ~ N(0, 0.1)
    noise = 0.1 * jax.random.normal(k_n, x.shape, jnp.float32)
    y_train = jax.block_until_ready(
        noisy_linear_forward(x, w, b, training=True, noise=noise))
    assert jnp.allclose(y_train, reference(x, w, b, noise), atol=1e-5, rtol=1e-5), \
        "training-path mismatch vs reference"

    print("KERNEL_OK")
</pallas_src>

<mosaic_0001>
module attributes {stable_mosaic.version = 11 : i64} {
  func.func @kernel(%arg0: i32, %arg1: memref<20xf32, #tpu.memory_space<smem>>, %arg2: memref<4x128xf32, #tpu.memory_space<vmem>>, %arg3: memref<4x128xf32, #tpu.memory_space<vmem>>) attributes {dimension_semantics = [#tpu.dimension_semantics<parallel>], iteration_bounds = array<i64: 1>, scalar_prefetch = 0 : i64, scratch_operands = 0 : i64, tpu.core_type = #tpu.core_type<tc>, window_params = [{transform_indices = @transform_0, window_bounds = array<i64: 20>}, {transform_indices = @transform_1, window_bounds = array<i64: 4, 128>}, {transform_indices = @transform_2, window_bounds = array<i64: 4, 128>}]} {
    %c0 = arith.constant 0 : index
    %c0_0 = arith.constant 0 : index
    %0 = vector.load %arg2[%c0, %c0_0] : memref<4x128xf32, #tpu.memory_space<vmem>>, vector<4x128xf32>
    %1 = vector.extract_strided_slice %0 {offsets = [0, 0], sizes = [1, 128], strides = [1, 1]} : vector<4x128xf32> to vector<1x128xf32>
    %2 = vector.extract_strided_slice %0 {offsets = [1, 0], sizes = [1, 128], strides = [1, 1]} : vector<4x128xf32> to vector<1x128xf32>
    %3 = vector.extract_strided_slice %0 {offsets = [2, 0], sizes = [1, 128], strides = [1, 1]} : vector<4x128xf32> to vector<1x128xf32>
    %4 = vector.extract_strided_slice %0 {offsets = [3, 0], sizes = [1, 128], strides = [1, 1]} : vector<4x128xf32> to vector<1x128xf32>
    %c0_1 = arith.constant 0 : index
    %5 = memref.load %arg1[%c0_1] : memref<20xf32, #tpu.memory_space<smem>>
    %6 = vector.broadcast %5 : f32 to vector<1x128xf32>
    %7 = arith.mulf %6, %1 : vector<1x128xf32>
    %c4 = arith.constant 4 : index
    %8 = memref.load %arg1[%c4] : memref<20xf32, #tpu.memory_space<smem>>
    %9 = vector.broadcast %8 : f32 to vector<1x128xf32>
    %10 = arith.mulf %9, %2 : vector<1x128xf32>
    %11 = arith.addf %7, %10 : vector<1x128xf32>
    %c8 = arith.constant 8 : index
    %12 = memref.load %arg1[%c8] : memref<20xf32, #tpu.memory_space<smem>>
    %13 = vector.broadcast %12 : f32 to vector<1x128xf32>
    %14 = arith.mulf %13, %3 : vector<1x128xf32>
    %15 = arith.addf %11, %14 : vector<1x128xf32>
    %c12 = arith.constant 12 : index
    %16 = memref.load %arg1[%c12] : memref<20xf32, #tpu.memory_space<smem>>
    %17 = vector.broadcast %16 : f32 to vector<1x128xf32>
    %18 = arith.mulf %17, %4 : vector<1x128xf32>
    %19 = arith.addf %15, %18 : vector<1x128xf32>
    %c16 = arith.constant 16 : index
    %20 = memref.load %arg1[%c16] : memref<20xf32, #tpu.memory_space<smem>>
    %21 = vector.broadcast %20 : f32 to vector<1x128xf32>
    %22 = arith.addf %19, %21 : vector<1x128xf32>
    %c0_2 = arith.constant 0 : index
    %c0_3 = arith.constant 0 : index
    %23 = vector.load %arg3[%c0_2, %c0_3] : memref<4x128xf32, #tpu.memory_space<vmem>>, vector<1x128xf32>
    tpu.vector_store %arg3[%c0_2, %c0_3], %22 {strides = array<i32>} : memref<4x128xf32, #tpu.memory_space<vmem>>, vector<1x128xf32>,
    %c1 = arith.constant 1 : index
    %24 = memref.load %arg1[%c1] : memref<20xf32, #tpu.memory_space<smem>>
    %25 = vector.broadcast %24 : f32 to vector<1x128xf32>
    %26 = arith.mulf %25, %1 : vector<1x128xf32>
    %c5 = arith.constant 5 : index
    %27 = memref.load %arg1[%c5] : memref<20xf32, #tpu.memory_space<smem>>
    %28 = vector.broadcast %27 : f32 to vector<1x128xf32>
    %29 = arith.mulf %28, %2 : vector<1x128xf32>
    %30 = arith.addf %26, %29 : vector<1x128xf32>
    %c9 = arith.constant 9 : index
    %31 = memref.load %arg1[%c9] : memref<20xf32, #tpu.memory_space<smem>>
    %32 = vector.broadcast %31 : f32 to vector<1x128xf32>
    %33 = arith.mulf %32, %3 : vector<1x128xf32>
    %34 = arith.addf %30, %33 : vector<1x128xf32>
    %c13 = arith.constant 13 : index
    %35 = memref.load %arg1[%c13] : memref<20xf32, #tpu.memory_space<smem>>
    %36 = vector.broadcast %35 : f32 to vector<1x128xf32>
    %37 = arith.mulf %36, %4 : vector<1x128xf32>
    %38 = arith.addf %34, %37 : vector<1x128xf32>
    %c17 = arith.constant 17 : index
    %39 = memref.load %arg1[%c17] : memref<20xf32, #tpu.memory_space<smem>>
    %40 = vector.broadcast %39 : f32 to vector<1x128xf32>
    %41 = arith.addf %38, %40 : vector<1x128xf32>
    %c1_4 = arith.constant 1 : index
    %c0_5 = arith.constant 0 : index
    %42 = vector.load %arg3[%c1_4, %c0_5] : memref<4x128xf32, #tpu.memory_space<vmem>>, vector<1x128xf32>
    tpu.vector_store %arg3[%c1_4, %c0_5], %41 {strides = array<i32>} : memref<4x128xf32, #tpu.memory_space<vmem>>, vector<1x128xf32>,
    %c2 = arith.constant 2 : index
    %43 = memref.load %arg1[%c2] : memref<20xf32, #tpu.memory_space<smem>>
    %44 = vector.broadcast %43 : f32 to vector<1x128xf32>
    %45 = arith.mulf %44, %1 : vector<1x128xf32>
    %c6 = arith.constant 6 : index
    %46 = memref.load %arg1[%c6] : memref<20xf32, #tpu.memory_space<smem>>
    %47 = vector.broadcast %46 : f32 to vector<1x128xf32>
    %48 = arith.mulf %47, %2 : vector<1x128xf32>
    %49 = arith.addf %45, %48 : vector<1x128xf32>
    %c10 = arith.constant 10 : index
    %50 = memref.load %arg1[%c10] : memref<20xf32, #tpu.memory_space<smem>>
    %51 = vector.broadcast %50 : f32 to vector<1x128xf32>
    %52 = arith.mulf %51, %3 : vector<1x128xf32>
    %53 = arith.addf %49, %52 : vector<1x128xf32>
    %c14 = arith.constant 14 : index
    %54 = memref.load %arg1[%c14] : memref<20xf32, #tpu.memory_space<smem>>
    %55 = vector.broadcast %54 : f32 to vector<1x128xf32>
    %56 = arith.mulf %55, %4 : vector<1x128xf32>
    %57 = arith.addf %53, %56 : vector<1x128xf32>
    %c18 = arith.constant 18 : index
    %58 = memref.load %arg1[%c18] : memref<20xf32, #tpu.memory_space<smem>>
    %59 = vector.broadcast %58 : f32 to vector<1x128xf32>
    %60 = arith.addf %57, %59 : vector<1x128xf32>
    %c2_6 = arith.constant 2 : index
    %c0_7 = arith.constant 0 : index
    %61 = vector.load %arg3[%c2_6, %c0_7] : memref<4x128xf32, #tpu.memory_space<vmem>>, vector<1x128xf32>
    tpu.vector_store %arg3[%c2_6, %c0_7], %60 {strides = array<i32>} : memref<4x128xf32, #tpu.memory_space<vmem>>, vector<1x128xf32>,
    %c3 = arith.constant 3 : index
    %62 = memref.load %arg1[%c3] : memref<20xf32, #tpu.memory_space<smem>>
    %63 = vector.broadcast %62 : f32 to vector<1x128xf32>
    %64 = arith.mulf %63, %1 : vector<1x128xf32>
    %c7 = arith.constant 7 : index
    %65 = memref.load %arg1[%c7] : memref<20xf32, #tpu.memory_space<smem>>
    %66 = vector.broadcast %65 : f32 to vector<1x128xf32>
    %67 = arith.mulf %66, %2 : vector<1x128xf32>
    %68 = arith.addf %64, %67 : vector<1x128xf32>
    %c11 = arith.constant 11 : index
    %69 = memref.load %arg1[%c11] : memref<20xf32, #tpu.memory_space<smem>>
    %70 = vector.broadcast %69 : f32 to vector<1x128xf32>
    %71 = arith.mulf %70, %3 : vector<1x128xf32>
    %72 = arith.addf %68, %71 : vector<1x128xf32>
    %c15 = arith.constant 15 : index
    %73 = memref.load %arg1[%c15] : memref<20xf32, #tpu.memory_space<smem>>
    %74 = vector.broadcast %73 : f32 to vector<1x128xf32>
    %75 = arith.mulf %74, %4 : vector<1x128xf32>
    %76 = arith.addf %72, %75 : vector<1x128xf32>
    %c19 = arith.constant 19 : index
    %77 = memref.load %arg1[%c19] : memref<20xf32, #tpu.memory_space<smem>>
    %78 = vector.broadcast %77 : f32 to vector<1x128xf32>
    %79 = arith.addf %76, %78 : vector<1x128xf32>
    %c3_8 = arith.constant 3 : index
    %c0_9 = arith.constant 0 : index
    %80 = vector.load %arg3[%c3_8, %c0_9] : memref<4x128xf32, #tpu.memory_space<vmem>>, vector<1x128xf32>
    tpu.vector_store %arg3[%c3_8, %c0_9], %79 {strides = array<i32>} : memref<4x128xf32, #tpu.memory_space<vmem>>, vector<1x128xf32>,
    return
  }
  func.func @transform_0(%arg0: i32) -> i32 {
    %c0_i32 = arith.constant 0 : i32
    %c0_i32_0 = arith.constant 0 : i32
    return %c0_i32 : i32
  }
  func.func @transform_1(%arg0: i32) -> (i32, i32) {
    %c0_i32 = arith.constant 0 : i32
    %c0_i32_0 = arith.constant 0 : i32
    return %c0_i32, %arg0 : i32, i32
  }
  func.func @transform_2(%arg0: i32) -> (i32, i32) {
    %c0_i32 = arith.constant 0 : i32
    %c0_i32_0 = arith.constant 0 : i32
    return %c0_i32, %arg0 : i32, i32
  }
}

</mosaic_0001>

<bundles_post_ra>
// kernel: tpu_custom_call.1
= control target key start
LH: loop header
LB: loop body
LE: loop exit
PB: predicated region body
PF: predicated region fallthrough
CT: control target
= control target key end

     0   :  { %7 = vsyncpa [#allocation5], 0  ;;  %s354_s0 = inlined_call_operand.hbm [shape: f32[20], index: 0, kind: input, shape index: {}]   ;;  %s355_s1 = inlined_call_operand.hbm [shape: f32[4,128], index: 1, kind: input, shape index: {}]   ;;  %s356_s2 = inlined_call_operand.hbm [shape: f32[4,128], index: 2, kind: output, shape index: {}]  }
   0x1   :  { %8 = vsyncpa [#allocation3], 0 }
   0x2   :  { %9 = vsyncpa [#allocation4], 0  ;;  %s186_s11 = scalar_lea.hbm %s354_s0, 16 }
   0x3   :  { %p187_p0 = scmp.ne.s32.totalorder %s354_s0, %s186_s11  ;;  %p190_p1 = scmp.lt.u32.totalorder %s186_s11, %s354_s0 }
   0x5   :  { %p192_p2 = pnand %p190_p1, %p187_p0 }
   0x7   :  { %195 = shalt.err (!%p192_p2)
}
   0x8   :  { %s246_s16 = smov [#allocation2]   ;;  %s247_s19 = smov [#allocation6]  }
   0x9   :  { %17 = dma.hbm_to_smem %s354_s0, 16, %s246_s16, [#allocation5]  }
   0xa   :  { %s24_s20 = sshll.u32 %s247_s19, 4  ;;  %s196_s23 = scalar_lea.hbm %s355_s1, 64  ;;  %s25_s20 = int_to_ptr.vmem [resolvable:$true] %s24_s20 }
   0xb   :  { %p197_p3 = scmp.ne.s32.totalorder %s355_s1, %s196_s23  ;;  %p200_p4 = scmp.lt.u32.totalorder %s196_s23, %s355_s1 }
   0xd   :  { %p202_p5 = pnand %p200_p4, %p197_p3 }
   0xf   :  { %205 = shalt.err (!%p202_p5)
}
  0x10   :  { %s206_s28 = scalar_lea.vmem %s25_s20, 64  ;;  %p211_p7 = scmp.lt.s32.totalorder %s25_s20, %s25_s20 }
  0x11   :  { %p207_p6 = scmp.ne.s32.totalorder %s25_s20, %s206_s28  ;;  %p212_p8 = scmp.lt.s32.totalorder %s206_s28, %s206_s28 }
  0x13   :  { %p213_p9 = por %p212_p8, %p211_p7 }
  0x15   :  { %p214_p10 = pnand %p213_p9, %p207_p6 }
  0x17   :  { %217 = shalt.err (!%p214_p10)
}
  0x18   :  { %27 = dma.hbm_to_vmem [thread:$0]  %s355_s1, 64, %s25_s20, [#allocation3]  }
  0x19   :  { %240 = dma.done.wait [#allocation5], 16  }
  0x1a   :  { %241 = vsyncadd [#allocation5], 4294967280 }
  0x1b   :  { %242 = dma.done.wait [#allocation3], 64  }
  0x1c   :  { %243 = vsyncadd [#allocation3], 4294967232 }
  0x1d   :  { %34 = sfence }
  0x1e   :  { %s36_s30 = sld [smem:[#allocation2]]  ;;  %s164_s3 = sld [smem:[#allocation2 + $0x4]]  ;;  %v290_v0 = vld [vmem:[#allocation6] sm:$0xf] }
  0x1f   :  { %s165_s4 = sld [smem:[#allocation2 + $0x8]]  ;;  %s166_s5 = sld [smem:[#allocation2 + $0xc]] }
  0x20   :  { %s288_s6 = sld [smem:[#allocation2 + $0x10]]  ;;  %s168_s7 = sld [smem:[#allocation2 + $0x1]] }
  0x21   :  { %s169_s8 = sld [smem:[#allocation2 + $0x5]]  ;;  %s170_s9 = sld [smem:[#allocation2 + $0x9]] }
  0x22   :  { %s292_s10 = sld [smem:[#allocation2 + $0xd]]  ;;  %s294_s11 = sld [smem:[#allocation2 + $0x2]] }
  0x23   :  { %s296_s1 = sld [smem:[#allocation2 + $0x6]]  ;;  %s298_s12 = sld [smem:[#allocation2 + $0xa]] }
  0x24   :  { %v37_v1 = vstv %s36_s30  ;;  %v40_v2 = vstv %s164_s3  ;;  %s300_s13 = sld [smem:[#allocation2 + $0xe]]  ;;  %s304_s14 = sld [smem:[#allocation2 + $0x11]] }
  0x25   :  { %v38_v3 = vmul.f32 %v37_v1, %v290_v0  ;;  %v41_v4 = vmul.f32 %v40_v2, %v290_v0  ;;  %v47_v5 = vstv %s165_s4  ;;  %v54_v6 = vstv %s166_s5  ;;  %s306_s15 = sld [smem:[#allocation2 + $0x3]]  ;;  %s311_s16 = sld [smem:[#allocation2 + $0x7]] }
  0x26   :  { %v48_v7 = vmul.f32 %v47_v5, %v290_v0  ;;  %v55_v8 = vmul.f32 %v54_v6, %v290_v0  ;;  %v65_v9 = vstv %s168_s7  ;;  %v61_v11 = vstv %s288_s6  ;;  %s313_s17 = sld [smem:[#allocation2 + $0xb]]  ;;  %s320_s18 = sld [smem:[#allocation2 + $0xf]] }
  0x27   :  { %v43_v10 = vrot.slane %v41_v4, 1  ;;  %v68_v12 = vstv %s169_s8  ;;  %v75_v13 = vstv %s170_s9  ;;  %v66_v15 = vmul.f32 %v65_v9, %v290_v0  ;;  %s327_s19 = sld [smem:[#allocation2 + $0x12]]  ;;  %s182_s20 = sld [smem:[#allocation2 + $0x13]] }
  0x28   :  { %v50_v14 = vrot.slane %v48_v7, 2  ;;  %v69_v16 = vmul.f32 %v68_v12, %v290_v0  ;;  %v76_v17 = vmul.f32 %v75_v13, %v290_v0  ;;  %v57_v19 = vrot.slane %v55_v8, 3  ;;  %s248_s21 = smov [#allocation7]  }
  0x29   :  { %v45_v18 = vadd.f32 %v43_v10, %v38_v3  ;;  %v82_v20 = vstv %s292_s10  ;;  %v93_v21 = vstv %s294_s11  ;;  %v96_v27 = vstv %s296_s1  ;;  %s154_s22 = sshll.u32 %s248_s21, 4  ;;  %s155_s22 = int_to_ptr.vmem [resolvable:$true] %s154_s22 }
  0x2a   :  { %v71_v22 = vrot.slane %v69_v16, 1  ;;  %v78_v23 = vrot.slane %v76_v17, 2  ;;  %v83_v24 = vmul.f32 %v82_v20, %v290_v0  ;;  %v94_v25 = vmul.f32 %v93_v21, %v290_v0  ;;  %s218_s23 = scalar_lea.vmem %s155_s22, 64  ;;  %p223_p12 = scmp.lt.s32.totalorder %s155_s22, %s155_s22 }
  0x2b   :  { %v52_v26 = vadd.f32 %v50_v14, %v45_v18  ;;  %v103_v28 = vstv %s298_s12  ;;  %v110_v29 = vstv %s300_s13  ;;  %v97_v32 = vmul.f32 %v96_v27, %v290_v0  ;;  %p219_p11 = scmp.ne.s32.totalorder %s155_s22, %s218_s23  ;;  %p224_p13 = scmp.lt.s32.totalorder %s218_s23, %s218_s23 }
  0x2c   :  { %v73_v30 = vadd.f32 %v71_v22, %v66_v15  ;;  %v85_v31 = vrot.slane %v83_v24, 3  ;;  %v104_v33 = vmul.f32 %v103_v28, %v290_v0  ;;  %v89_v35 = vstv %s304_s14 }
  0x2d   :  { %v59_v34 = vadd.f32 %v57_v19, %v52_v26  ;;  %v111_v36 = vmul.f32 %v110_v29, %v290_v0  ;;  %v121_v37 = vstv %s306_s15  ;;  %v99_v39 = vrot.slane %v97_v32, 1  ;;  %p225_p0 = por %p224_p13, %p223_p12 }
  0x2e   :  { %v80_v38 = vadd.f32 %v78_v23, %v73_v30  ;;  %v106_v40 = vrot.slane %v104_v33, 2  ;;  %v122_v41 = vmul.f32 %v121_v37, %v290_v0  ;;  %v124_v44 = vstv %s311_s16 }
  0x2f   :  { %v62_v42 = vadd.f32 %v61_v11, %v59_v34  ;;  %v113_v43 = vrot.slane %v111_v36, 3  ;;  %v131_v45 = vstv %s313_s17  ;;  %v101_v47 = vadd.f32 %v99_v39, %v94_v25  ;;  %p226_p1 = pnand %p225_p0, %p219_p11 }
  0x30   :  { %v87_v46 = vadd.f32 %v85_v31, %v80_v38  ;;  %v125_v48 = vmul.f32 %v124_v44, %v290_v0  ;;  %v132_v49 = vmul.f32 %v131_v45, %v290_v0  ;;  %v138_v50 = vstv %s320_s18 }
  0x31   :  { %63 = vst [vmem:[#allocation7] sm:$0x1] %v62_v42  ;;  %v108_v52 = vadd.f32 %v106_v40, %v101_v47  ;;  %v117_v55 = vstv %s327_s19  ;;  %v139_v56 = vmul.f32 %v138_v50, %v290_v0  ;;  %v145_v62 = vstv %s182_s20 }
  0x32   :  { %v90_v51 = vadd.f32 %v89_v35, %v87_v46  ;;  %v127_v53 = vrot.slane %v125_v48, 1  ;;  %v134_v54 = vrot.slane %v132_v49, 2 }
  0x33   :  { %v115_v57 = vadd.f32 %v113_v43, %v108_v52  ;;  %v141_v59 = vrot.slane %v139_v56, 3 }
  0x34   :  { %91 = vst [vmem:[#allocation7 + $0x1] sm:$0x1] %v90_v51  ;;  %v129_v58 = vadd.f32 %v127_v53, %v122_v41 }
  0x35   :  { %v118_v60 = vadd.f32 %v117_v55, %v115_v57 }
  0x36   :  { %v136_v61 = vadd.f32 %v134_v54, %v129_v58 }
  0x37   :  { %119 = vst [vmem:[#allocation7 + $0x2] sm:$0x1] %v118_v60 }
  0x38   :  { %v143_v63 = vadd.f32 %v141_v59, %v136_v61 }
  0x3a   :  { %v146_v1 = vadd.f32 %v145_v62, %v143_v63 }
  0x3c   :  { %147 = vst [vmem:[#allocation7 + $0x3] sm:$0x1] %v146_v1 }
  0x3d   :  { %229 = shalt.err (!%p226_p1)
}
  0x3e   :  { %s230_s26 = scalar_lea.hbm %s356_s2, 64 }
  0x3f   :  { %p231_p2 = scmp.ne.s32.totalorder %s356_s2, %s230_s26  ;;  %p234_p3 = scmp.lt.u32.totalorder %s230_s26, %s356_s2 }
  0x41   :  { %p236_p4 = pnand %p234_p3, %p231_p2 }
  0x43   :  { %239 = shalt.err (!%p236_p4)
}
  0x44   :  { %157 = dma.vmem_to_hbm [thread:$0]  %s155_s22, 64, %s356_s2, [#allocation4]  }
  0x45   :  { %244 = dma.done.wait [#allocation4], 64  }
  0x46   :  { %245 = vsyncadd [#allocation4], 4294967232 }
  0x47   :  { %161 = vsyncpa [#allocation3], 1 }
  0x48   :  { %162 = vsyncpa [#allocation4], 1 }
  0x49   :  { %163 = vsyncpa [#allocation5], 1 }

</bundles_post_ra>
